<compile_context>
chip_gen: v6e
topology: v6e:2x2x1
jax: 0.10.0
libtpu: 0.0.40
codegen_flags: <defaults>
</compile_context>

<pallas_src>
import jax
import jax.numpy as jnp
from jax.experimental import pallas as pl
from jax.experimental.pallas import tpu as pltpu


_LANE = 128
_SUBLANE = 8


def _round_up(x, m):
    return ((x + m - 1) // m) * m


def _cdiv(a, b):
    return (a + b - 1) // b


def _vmem_capacity_bytes():
    """Per-core VMEM capacity; conservative (v7x) default if the query fails."""
    try:
        info = pltpu.get_tpu_info()
        cap = int(getattr(info, "vmem_capacity_bytes", 0) or 0)
        if cap > 0:
            return cap
    except Exception:
        pass
    return 64 * 1024 * 1024


def _choose_batch_tile(B, row_bytes, budget):
    """Rows per block for the whole-HW path.

    Must be legal for a (tb, N_pad) output block: tb % 8 == 0 or tb == B.
    Returns 0 if even the smallest legal block exceeds the VMEM tile budget.
    """
    max_rows = max(1, budget // max(row_bytes, 1))
    if B <= _SUBLANE:
        return B if B <= max_rows else 0
    if max_rows < _SUBLANE:
        return 0
    tb = min(max_rows, 512, _round_up(B, _SUBLANE))
    tb = (tb // _SUBLANE) * _SUBLANE
    # Keep >= 2 batch blocks so the "parallel" B axis can shard across v7x's
    # two TensorCores (near-neutral on single-core v5e/v6e).
    if tb >= B:
        tb = max(_SUBLANE, _round_up(_cdiv(B, 2), _SUBLANE))
    return tb


def _make_fused_kernel(reduce_axis, inv_hw):
    """Whole-HW path: pool + matmul in one shot, no scratch accumulator."""

    def kernel(x_ref, w_ref, o_ref):
        # f32 accumulation of the spatial sum; 1/HW applied to the f32 partial.
        pooled = jnp.sum(x_ref[...], axis=reduce_axis, dtype=jnp.float32) * inv_hw
        o_ref[...] = jnp.dot(
            pooled, w_ref[...], preferred_element_type=jnp.float32
        ).astype(o_ref.dtype)

    return kernel


def _make_tiled_kernel(reduce_axis, t_hw, hw_total, inv_hw):
    """Fallback path: HW tiled on the grid, running f32 sum, ragged tail masked."""
    ragged = (hw_total % t_hw) != 0

    def kernel(x_ref, w_ref, o_ref, acc_ref):
        hw_i = pl.program_id(1)

        @pl.when(hw_i == 0)
        def _init():
            acc_ref[...] = jnp.zeros_like(acc_ref)

        x = x_ref[...]
        if ragged:
            pos = hw_i * t_hw + jax.lax.broadcasted_iota(
                jnp.int32, x.shape, reduce_axis
            )
            x = jnp.where(pos < hw_total, x, jnp.zeros_like(x))
        acc_ref[...] += jnp.sum(x, axis=reduce_axis, dtype=jnp.float32)

        @pl.when(hw_i == pl.num_programs(1) - 1)
        def _finalize():
            pooled = acc_ref[...] * inv_hw
            o_ref[...] = jnp.dot(
                pooled, w_ref[...], preferred_element_type=jnp.float32
            ).astype(o_ref.dtype)

    return kernel


def create_model_head(x_feat, fc_weight, *, channels_last=False, out_dtype=None):
    """Pallas implementation of create_model's post-backbone forward.

    x_feat   : [B, C, H, W] (channels_last=False, PyTorch NCHW) or [B, H, W, C]
    fc_weight: [n_class, C]  classifier.fc.weight (PyTorch layout)
    returns  : [B, n_class]  logits (dtype = out_dtype or x_feat.dtype)
    """
    if channels_last:
        B, H, W, C = x_feat.shape
    else:
        B, C, H, W = x_feat.shape
    n_class, c_w = fc_weight.shape
    assert c_w == C, "fc_weight in_features must match feature-map channels"
    HW = H * W
    out_dt = jnp.dtype(out_dtype) if out_dtype is not None else x_feat.dtype

    # Flatten spatial dims in place (metadata-only reshape; no HBM copy, no pad).
    if channels_last:
        x_flat = x_feat.reshape(B, HW, C)  # HW on the sublane axis
        reduce_axis, hw_align = 1, _SUBLANE
    else:
        x_flat = x_feat.reshape(B, C, HW)  # HW on the lane axis
        reduce_axis, hw_align = 2, _LANE

    # Classifier weight^T, lane-padded so the output store is unmasked.
    # Kept exact: the pooling scale is applied to the f32 accumulator in-kernel.
    N_pad = _round_up(n_class, _LANE)
    w_t = fc_weight.T
    if N_pad != n_class:
        w_t = jnp.pad(w_t, ((0, 0), (0, N_pad - n_class)))

    itemsize = jnp.dtype(x_flat.dtype).itemsize
    w_bytes = w_t.size * jnp.dtype(w_t.dtype).itemsize

    # Generation-aware tile budget (v7x: 64 MiB VMEM/TC; v5e/v6e: 128 MiB).
    vmem_cap = _vmem_capacity_bytes()
    budget = max(vmem_cap // 6, 2 * 1024 * 1024)

    inv_hw = 1.0 / float(HW)
    row_bytes = C * HW * itemsize
    tb = _choose_batch_tile(B, row_bytes, budget)

    if tb > 0:
        # ---- preferred path: whole-HW block, no reduction grid axis ----
        grid = (_cdiv(B, tb),)
        x_block = (tb, HW, C) if channels_last else (tb, C, HW)
        x_spec = pl.BlockSpec(x_block, lambda bi: (bi, 0, 0))
        w_idx = lambda bi: (0, 0)
        o_spec = pl.BlockSpec((tb, N_pad), lambda bi: (bi, 0))
        kernel = _make_fused_kernel(reduce_axis, inv_hw)
        scratch = []
        semantics = ("parallel",)
        x_tile_bytes = tb * row_bytes
    else:
        # ---- fallback: HW tiled on the grid (huge C*HW), running f32 sum ----
        tb = B if B <= _SUBLANE else _SUBLANE
        t_hw = hw_align
        hw_cap = _round_up(HW, hw_align)
        while (t_hw + hw_align) <= hw_cap and \
                tb * C * (t_hw + hw_align) * itemsize <= budget:
            t_hw += hw_align
        grid = (_cdiv(B, tb), _cdiv(HW, t_hw))
        if channels_last:
            x_spec = pl.BlockSpec((tb, t_hw, C), lambda bi, hi: (bi, hi, 0))
        else:
            x_spec = pl.BlockSpec((tb, C, t_hw), lambda bi, hi: (bi, 0, hi))
        w_idx = lambda bi, hi: (0, 0)
        o_spec = pl.BlockSpec((tb, N_pad), lambda bi, hi: (bi, 0))
        kernel = _make_tiled_kernel(reduce_axis, t_hw, HW, inv_hw)
        scratch = [pltpu.VMEM((tb, C), jnp.float32)]
        semantics = ("parallel", "arbitrary")
        x_tile_bytes = tb * C * t_hw * itemsize

    # VMEM limit derived from the actual tiles (leave headroom under physical cap).
    out_tile_bytes = tb * N_pad * jnp.dtype(out_dt).itemsize
    acc_bytes = tb * C * 4
    est = 2 * x_tile_bytes + 2 * w_bytes + 2 * out_tile_bytes + acc_bytes + (1 << 20)
    vmem_limit = int(
        min(max(est + (4 << 20), 16 << 20), max(vmem_cap - (8 << 20), 16 << 20))
    )

    def _weight_spec(single_buffered):
        # The weight block index is constant across the whole grid: single-buffer
        # it to return its second VMEM copy to the x-tile budget (v7x especially).
        if single_buffered:
            try:
                return pl.BlockSpec((C, N_pad), w_idx, pipeline_mode=pl.Buffered(1))
            except TypeError:
                pass
        return pl.BlockSpec((C, N_pad), w_idx)

    def _run(single_buffered_weight):
        return pl.pallas_call(
            kernel,
            out_shape=jax.ShapeDtypeStruct((B, N_pad), out_dt),
            grid_spec=pltpu.PrefetchScalarGridSpec(
                num_scalar_prefetch=0,
                grid=grid,
                in_specs=[x_spec, _weight_spec(single_buffered_weight)],
                out_specs=o_spec,
                scratch_shapes=scratch,
            ),
            compiler_params=pltpu.CompilerParams(
                dimension_semantics=semantics,
                vmem_limit_bytes=vmem_limit,
            ),
        )(x_flat, w_t)

    try:
        out = _run(True)
    except Exception:
        # Conservative fallback if this Mosaic build rejects Buffered(1).
        out = _run(False)

    return out[:, :n_class] if N_pad != n_class else out


def reference_head(x_feat, fc_weight):
    """Pure-JAX reference (mirrors the PyTorch forward in eval mode, NCHW)."""
    pooled = jnp.mean(x_feat, axis=(2, 3))  # AdaptiveAvgPool2d(1) + view
    return pooled @ fc_weight.T             # Dropout(eval)=id, Linear(bias=False)


if __name__ == "__main__":
    key = jax.random.PRNGKey(0)
    k_x, k_w = jax.random.split(key)

    # Small shapes consistent with the module: batch=2, feature channels=32,
    # spatial 8x8 (stand-in for the backbone stage-5 feature map), 10 classes.
    B, C, H, W, N_CLASS = 2, 32, 8, 8, 10

    x_feat = jax.random.normal(k_x, (B, C, H, W), dtype=jnp.float32)
    bound = 1.0 / jnp.sqrt(jnp.float32(C))
    fc_weight = jax.random.uniform(
        k_w, (N_CLASS, C), dtype=jnp.float32, minval=-bound, maxval=bound
    )

    ref = reference_head(x_feat, fc_weight)

    # NCHW entry point (PyTorch layout).
    out = jax.block_until_ready(create_model_head(x_feat, fc_weight))
    assert out.shape == (B, N_CLASS)
    assert jnp.allclose(out, ref, atol=1e-4, rtol=1e-4), "NCHW mismatch vs reference"

    # Channels-last entry point (avoids a transpose when the backbone is NHWC).
    x_nhwc = jnp.transpose(x_feat, (0, 2, 3, 1))
    out_nhwc = jax.block_until_ready(
        create_model_head(x_nhwc, fc_weight, channels_last=True)
    )
    assert jnp.allclose(out_nhwc, ref, atol=1e-4, rtol=1e-4), "NHWC mismatch vs reference"

    print("KERNEL_OK")
</pallas_src>

<mosaic_0001>
module attributes {stable_mosaic.version = 11 : i64} {
  func.func @kernel(%arg0: i32, %arg1: memref<2x32x64xf32, #tpu.memory_space<vmem>>, %arg2: memref<32x128xf32, #tpu.memory_space<vmem>>, %arg3: memref<2x128xf32, #tpu.memory_space<vmem>>) attributes {dimension_semantics = [#tpu.dimension_semantics<parallel>], iteration_bounds = array<i64: 1>, scalar_prefetch = 0 : i64, scratch_operands = 0 : i64, tpu.core_type = #tpu.core_type<tc>, window_params = [{transform_indices = @transform_0, window_bounds = array<i64: 2, 32, 64>}, {pipeline_mode = #tpu.pipeline_mode<synchronous>, transform_indices = @transform_1, window_bounds = array<i64: 32, 128>}, {transform_indices = @transform_2, window_bounds = array<i64: 2, 128>}]} {
    %c0 = arith.constant 0 : index
    %c0_0 = arith.constant 0 : index
    %c0_1 = arith.constant 0 : index
    %0 = vector.load %arg1[%c0, %c0_0, %c0_1] : memref<2x32x64xf32, #tpu.memory_space<vmem>>, vector<2x32x64xf32>
    %cst = arith.constant dense<0.000000e+00> : vector<2x32xf32>
    %1 = vector.multi_reduction <add>, %0, %cst [2] : vector<2x32x64xf32> to vector<2x32xf32>
    %cst_2 = arith.constant 1.562500e-02 : f32
    %2 = vector.broadcast %cst_2 : f32 to vector<2x32xf32>
    %3 = arith.mulf %1, %2 : vector<2x32xf32>
    %c0_3 = arith.constant 0 : index
    %c0_4 = arith.constant 0 : index
    %4 = vector.load %arg2[%c0_3, %c0_4] : memref<32x128xf32, #tpu.memory_space<vmem>>, vector<32x128xf32>
    %cst_5 = arith.constant dense<0.000000e+00> : vector<2x128xf32>
    %5 = tpu.matmul %3, %4, %cst_5 {dimension_numbers = #tpu.dot_dimension_numbers<[1], [0], [0], [1], [0, 0, 1, 1], [], []>} : vector<2x32xf32>, vector<32x128xf32>, vector<2x128xf32> -> vector<2x128xf32>
    %c0_6 = arith.constant 0 : index
    %c0_7 = arith.constant 0 : index
    %6 = vector.load %arg3[%c0_6, %c0_7] : memref<2x128xf32, #tpu.memory_space<vmem>>, vector<2x128xf32>
    tpu.vector_store %arg3[%c0_6, %c0_7], %5 {strides = array<i32>} : memref<2x128xf32, #tpu.memory_space<vmem>>, vector<2x128xf32>,
    return
  }
  func.func @transform_0(%arg0: i32) -> (i32, i32, i32) {
    %c0_i32 = arith.constant 0 : i32
    %c0_i32_0 = arith.constant 0 : i32
    %c0_i32_1 = arith.constant 0 : i32
    return %arg0, %c0_i32, %c0_i32_0 : i32, i32, i32
  }
  func.func @transform_1(%arg0: i32) -> (i32, i32) {
    %c0_i32 = arith.constant 0 : i32
    %c0_i32_0 = arith.constant 0 : i32
    %c0_i32_1 = arith.constant 0 : i32
    return %c0_i32, %c0_i32_0 : i32, i32
  }
  func.func @transform_2(%arg0: i32) -> (i32, i32) {
    %c0_i32 = arith.constant 0 : i32
    %c0_i32_0 = arith.constant 0 : i32
    return %arg0, %c0_i32 : i32, i32
  }
}

module attributes {stable_mosaic.version = 11 : i64} {
  func.func @kernel(%arg0: i32, %arg1: memref<2x32x64xf32, #tpu.memory_space<vmem>>, %arg2: memref<32x128xf32, #tpu.memory_space<vmem>>, %arg3: memref<2x128xf32, #tpu.memory_space<vmem>>) attributes {dimension_semantics = [#tpu.dimension_semantics<parallel>], iteration_bounds = array<i64: 1>, scalar_prefetch = 0 : i64, scratch_operands = 0 : i64, tpu.core_type = #tpu.core_type<tc>, window_params = [{transform_indices = @transform_0, window_bounds = array<i64: 2, 32, 64>}, {pipeline_mode = #tpu.pipeline_mode<synchronous>, transform_indices = @transform_1, window_bounds = array<i64: 32, 128>}, {transform_indices = @transform_2, window_bounds = array<i64: 2, 128>}]} {
    %c0 = arith.constant 0 : index
    %c0_0 = arith.constant 0 : index
    %c0_1 = arith.constant 0 : index
    %0 = vector.load %arg1[%c0, %c0_0, %c0_1] : memref<2x32x64xf32, #tpu.memory_space<vmem>>, vector<2x32x64xf32>
    %cst = arith.constant dense<0.000000e+00> : vector<2x32xf32>
    %1 = vector.multi_reduction <add>, %0, %cst [2] : vector<2x32x64xf32> to vector<2x32xf32>
    %cst_2 = arith.constant 1.562500e-02 : f32
    %2 = vector.broadcast %cst_2 : f32 to vector<2x32xf32>
    %3 = arith.mulf %1, %2 : vector<2x32xf32>
    %c0_3 = arith.constant 0 : index
    %c0_4 = arith.constant 0 : index
    %4 = vector.load %arg2[%c0_3, %c0_4] : memref<32x128xf32, #tpu.memory_space<vmem>>, vector<32x128xf32>
    %cst_5 = arith.constant dense<0.000000e+00> : vector<2x128xf32>
    %5 = tpu.matmul %3, %4, %cst_5 {dimension_numbers = #tpu.dot_dimension_numbers<[1], [0], [0], [1], [0, 0, 1, 1], [], []>} : vector<2x32xf32>, vector<32x128xf32>, vector<2x128xf32> -> vector<2x128xf32>
    %c0_6 = arith.constant 0 : index
    %c0_7 = arith.constant 0 : index
    %6 = vector.load %arg3[%c0_6, %c0_7] : memref<2x128xf32, #tpu.memory_space<vmem>>, vector<2x128xf32>
    tpu.vector_store %arg3[%c0_6, %c0_7], %5 {strides = array<i32>} : memref<2x128xf32, #tpu.memory_space<vmem>>, vector<2x128xf32>,
    return
  }
  func.func @transform_0(%arg0: i32) -> (i32, i32, i32) {
    %c0_i32 = arith.constant 0 : i32
    %c0_i32_0 = arith.constant 0 : i32
    %c0_i32_1 = arith.constant 0 : i32
    return %arg0, %c0_i32, %c0_i32_0 : i32, i32, i32
  }
  func.func @transform_1(%arg0: i32) -> (i32, i32) {
    %c0_i32 = arith.constant 0 : i32
    %c0_i32_0 = arith.constant 0 : i32
    %c0_i32_1 = arith.constant 0 : i32
    return %c0_i32, %c0_i32_0 : i32, i32
  }
  func.func @transform_2(%arg0: i32) -> (i32, i32) {
    %c0_i32 = arith.constant 0 : i32
    %c0_i32_0 = arith.constant 0 : i32
    return %arg0, %c0_i32 : i32, i32
  }
}

</mosaic_0001>

<bundles_post_ra>
// kernel: tpu_custom_call.1
= control target key start
LH: loop header
LB: loop body
LE: loop exit
PB: predicated region body
PF: predicated region fallthrough
CT: control target
= control target key end

     0   :  { %7 = vsyncpa [#allocation3], 0  ;;  %s362_s0 = inlined_call_operand.hbm [shape: f32[2,32,64], index: 0, kind: input, shape index: {}]   ;;  %s363_s1 = inlined_call_operand.hbm [shape: f32[32,128], index: 1, kind: input, shape index: {}]   ;;  %s364_s2 = inlined_call_operand.hbm [shape: f32[2,128], index: 2, kind: output, shape index: {}]  }
   0x1   :  { %8 = vsyncpa [#allocation6], 0 }
   0x2   :  { %9 = vsyncpa [#allocation4], 0  ;;  %s321_s9 = smov [#allocation2]  }
   0x3   :  { %s15_s10 = sshll.u32 %s321_s9, 4  ;;  %s16_s10 = int_to_ptr.vmem [resolvable:$true] %s15_s10 }
   0x4   :  { %s263_s11 = scalar_lea.vmem %s16_s10, 1024  ;;  %p268_p1 = scmp.lt.s32.totalorder %s16_s10, %s16_s10 }
   0x5   :  { %p264_p0 = scmp.ne.s32.totalorder %s16_s10, %s263_s11  ;;  %p269_p2 = scmp.lt.s32.totalorder %s263_s11, %s263_s11 }
   0x7   :  { %p270_p3 = por %p269_p2, %p268_p1 }
   0x9   :  { %p271_p4 = pnand %p270_p3, %p264_p0 }
   0xb   :  { %274 = shalt.err (!%p271_p4)
}
   0xc   :  { %s322_s12 = smov 128   ;;  %s323_s13 = smov 8  }
   0xd   :  { %21 = dma.hbm_to_vmem [thread:$0]  %s362_s0, 1024, %s16_s10, [#allocation3], %s322_s12, %s322_s12, %s323_s13  }
   0xe   :  { %s324_s16 = smov [#allocation5]  }
   0xf   :  { %s27_s17 = sshll.u32 %s324_s16, 4  ;;  %s28_s17 = int_to_ptr.vmem [resolvable:$true] %s27_s17 }
  0x10   :  { %s283_s18 = scalar_lea.vmem %s28_s17, 512  ;;  %p288_p6 = scmp.lt.s32.totalorder %s28_s17, %s28_s17 }
  0x11   :  { %p284_p5 = scmp.ne.s32.totalorder %s28_s17, %s283_s18  ;;  %p289_p7 = scmp.lt.s32.totalorder %s283_s18, %s283_s18 }
  0x13   :  { %p290_p8 = por %p289_p7, %p288_p6 }
  0x15   :  { %p291_p9 = pnand %p290_p8, %p284_p5 }
  0x17   :  { %294 = shalt.err (!%p291_p9)
}
  0x18   :  { %33 = dma.hbm_to_vmem [thread:$0]  %s363_s1, 512, %s28_s17, [#allocation6], %s322_s12, %s322_s12, %s323_s13  }
  0x19   :  { %315 = dma.done.wait [#allocation3], 1024  }
  0x1a   :  { %316 = vsyncadd [#allocation3], 4294966272 }
  0x1b   :  { %317 = dma.done.wait [#allocation6], 512  }
  0x1c   :  { %318 = vsyncadd [#allocation6], 4294966784  ;;  %vm48_vm0 = vcmask 523264   ;;  %v44_v0 = vld [vmem:[#allocation2 + $0x20] sm:$0xff]  ;;  %v45_v2 = vld [vmem:[#allocation2 + $0x28] sm:$0xff]  ;;  %v325_v16 = vmov 0.0   ;;  %v93_v21 = vlaneseq }
  0x1d   :  { %v40_v1 = vld [vmem:[#allocation2] sm:$0xff]  ;;  %v61_v3 = vsel %vm48_vm0, %v44_v0, 0.0  ;;  %v41_v5 = vld [vmem:[#allocation2 + $0x8] sm:$0xff]  ;;  %v64_v6 = vsel %vm48_vm0, %v45_v2, 0.0  ;;  %v46_v8 = vld [vmem:[#allocation2 + $0x30] sm:$0xff]  ;;  %237 = vmatprep.subr.mxu0 %v325_v16  ;;  %vm326_vm1 = vmmov 0  }
  0x1e   :  { %v49_v4 = vsel %vm48_vm0, %v40_v1, 0.0  ;;  %62 = vadd.xlane.f32.xlu1 %v61_v3  ;;  %v52_v7 = vsel %vm48_vm0, %v41_v5, 0.0  ;;  %v42_v9 = vld [vmem:[#allocation2 + $0x10] sm:$0xff]  ;;  %v67_v10 = vsel %vm48_vm0, %v46_v8, 0.0  ;;  %v47_v12 = vld [vmem:[#allocation2 + $0x38] sm:$0xff]  ;;  %v82_v19 = vld [vmem:[#allocation5 + $0x8] sm:$0xff]  ;;  %245 = vmatprep.mubr.msk.f32.mxu0 %vm326_vm1, %v325_v16 }
  0x1f   :  { %50 = vadd.xlane.f32.xlu0 %v49_v4  ;;  %v55_v11 = vsel %vm48_vm0, %v42_v9, 0.0  ;;  %v43_v13 = vld [vmem:[#allocation2 + $0x18] sm:$0xff]  ;;  %v70_v14 = vsel %vm48_vm0, %v47_v12, 0.0  ;;  %v83_v18 = vld [vmem:[#allocation5 + $0x10] sm:$0xff]  ;;  %v81_v20 = vld [vmem:[#allocation5] sm:$0xff]  ;;  %v94_v24 = vand.u32 127, %v93_v21 }
  0x20   :  { %v58_v15 = vsel %vm48_vm0, %v43_v13, 0.0  ;;  %v84_v17 = vld [vmem:[#allocation5 + $0x18] sm:$0xff]  ;;  %v96_v26 = vshrl.u32 %v93_v21, 7  ;;  %vm104_vm2 = vcmask 130112   ;;  %vm111_vm3 = vcmask 195712   ;;  %s327_s0 = smov [#allocation7]  }
  0x21   :  { %238 = vmatpush3.msra.mxu0 %v84_v17  ;;  %v99_v25 = vadd.s32 4294967288, %v94_v24  ;;  %v106_v29 = vadd.s32 4294967280, %v94_v24  ;;  %v113_v33 = vadd.s32 4294967272, %v94_v24  ;;  %vm118_vm4 = vcmask 261312   ;;  %s221_s1 = sshll.u32 %s327_s0, 4  ;;  %s222_s1 = int_to_ptr.vmem [resolvable:$true] %s221_s1 }
  0x22   :  { %65 = vadd.xlane.f32.xlu1 %v64_v6  ;;  %239 = vmatprep.subr.mxu0 %v325_v16  ;;  %v97_v34 = vsub.s32 %v94_v24, %v96_v26  ;;  %vm139_vm5 = vcmask 1041409   ;;  %vm141_vm6 = vcmask 261120   ;;  %s295_s21 = scalar_lea.vmem %s222_s1, 32  ;;  %p300_p11 = scmp.lt.s32.totalorder %s222_s1, %s222_s1 }
  0x23   :  { %53 = vadd.xlane.f32.xlu0 %v52_v7  ;;  %240 = vmatpush3.msra.mxu0 %v83_v18  ;;  %v102_v30 = vsub.s32 %v99_v25, %v96_v26  ;;  %v109_v35 = vsub.s32 %v106_v29, %v96_v26  ;;  %v116_v44 = vsub.s32 %v113_v33, %v96_v26  ;;  %p296_p10 = scmp.ne.s32.totalorder %s222_s1, %s295_s21  ;;  %p301_p12 = scmp.lt.s32.totalorder %s295_s21, %s295_s21 }
  0x24   :  { %241 = vmatprep.subr.mxu0 %v325_v16 }
  0x25   :  { %242 = vmatpush3.msra.mxu0 %v82_v19  ;;  %p302_p13 = por %p301_p12, %p300_p11 }
  0x26   :  { %68 = vadd.xlane.f32.xlu1 %v67_v10  ;;  %243 = vmatprep.subr.mxu0 %v325_v16 }
  0x27   :  { %56 = vadd.xlane.f32.xlu0 %v55_v11  ;;  %244 = vmatpush3.msra.mxu0 %v81_v20  ;;  %p303_p0 = pnand %p302_p13, %p296_p10 }
  0x2a   :  { %71 = vadd.xlane.f32.xlu1 %v70_v14 }
  0x2b   :  { %59 = vadd.xlane.f32.xlu0 %v58_v15 }
  0xa7   :  { %v63_v22 = vpop.xlane.xlu1 %62 }
  0xa8   :  { %v51_v23 = vpop.xlane.xlu0 %50  ;;  %v77_v38 = vmul.f32 0.015625, %v63_v22 }
  0xa9   :  { %v73_v39 = vmul.f32 0.015625, %v51_v23 }
  0xaa   :  { %v123_v49 = vrot.slane %v77_v38, %v97_v34 }
  0xab   :  { %v66_v27 = vpop.xlane.xlu1 %65  ;;  %v98_v50 = vrot.slane %v73_v39, %v97_v34 }
  0xac   :  { %v54_v28 = vpop.xlane.xlu0 %53  ;;  %v78_v31 = vmul.f32 0.015625, %v66_v27 }
  0xad   :  { %v74_v32 = vmul.f32 0.015625, %v54_v28 }
  0xae   :  { %v127_v42 = vrot.slane %v78_v31, %v102_v30 }
  0xaf   :  { %v69_v36 = vpop.xlane.xlu1 %68  ;;  %v103_v43 = vrot.slane %v74_v32, %v102_v30 }
  0xb0   :  { %v57_v37 = vpop.xlane.xlu0 %56  ;;  %v79_v40 = vmul.f32 0.015625, %v69_v36  ;;  %v128_v53 = vsel %vm104_vm2, %v127_v42, %v123_v49 }
  0xb1   :  { %v75_v41 = vmul.f32 0.015625, %v57_v37  ;;  %v105_v54 = vsel %vm104_vm2, %v103_v43, %v98_v50 }
  0xb2   :  { %v132_v45 = vrot.slane %v79_v40, %v109_v35 }
  0xb3   :  { %v110_v46 = vrot.slane %v75_v41, %v109_v35  ;;  %v72_v47 = vpop.xlane.xlu1 %71 }
  0xb4   :  { %v60_v48 = vpop.xlane.xlu0 %59  ;;  %v80_v51 = vmul.f32 0.015625, %v72_v47  ;;  %v133_v57 = vsel %vm111_vm3, %v132_v45, %v128_v53 }
  0xb5   :  { %v76_v52 = vmul.f32 0.015625, %v60_v48  ;;  %v112_v58 = vsel %vm111_vm3, %v110_v46, %v105_v54 }
  0xb6   :  { %v137_v55 = vrot.slane %v80_v51, %v116_v44 }
  0xb7   :  { %v117_v56 = vrot.slane %v76_v52, %v116_v44 }
  0xb8   :  { %v138_v60 = vsel %vm118_vm4, %v137_v55, %v133_v57 }
  0xb9   :  { %v119_v59 = vsel %vm118_vm4, %v117_v56, %v112_v58 }
  0xba   :  { %v140_v61 = vsel %vm139_vm5, %v138_v60, %v119_v59 }
  0xbb   :  { %246 = vmatmul.mubr.msk.f32.vlgmr.msra.gmra.mxu0 %vm141_vm6, %v140_v61 }
 0x17b   :  { %v210_v62 = vpop.f32.mrf.mxu0 }
 0x17c   :  { %214 = vst [vmem:[#allocation7] sm:$0x3] %v210_v62 }
 0x17d   :  { %v247_v63 = vpop.f32.mrf.mxu0 }
 0x17e   :  { %306 = shalt.err (!%p303_p0)
}
 0x17f   :  { %224 = dma.vmem_to_hbm [thread:$0]  %s222_s1, 32, %s364_s2, [#allocation4]  }
 0x180   :  { %319 = dma.done.wait [#allocation4], 32  }
 0x181   :  { %320 = vsyncadd [#allocation4], 4294967264 }
 0x182   :  { %228 = vsyncpa [#allocation3], 1 }
 0x183   :  { %229 = vsyncpa [#allocation6], 1 }
 0x184   :  { %230 = vsyncpa [#allocation4], 1 }

// kernel: tpu_custom_call.1
= control target key start
LH: loop header
LB: loop body
LE: loop exit
PB: predicated region body
PF: predicated region fallthrough
CT: control target
= control target key end

     0   :  { %7 = vsyncpa [#allocation3], 0  ;;  %s362_s0 = inlined_call_operand.hbm [shape: f32[2,32,64], index: 0, kind: input, shape index: {}]   ;;  %s363_s1 = inlined_call_operand.hbm [shape: f32[32,128], index: 1, kind: input, shape index: {}]   ;;  %s364_s2 = inlined_call_operand.hbm [shape: f32[2,128], index: 2, kind: output, shape index: {}]  }
   0x1   :  { %8 = vsyncpa [#allocation6], 0 }
   0x2   :  { %9 = vsyncpa [#allocation4], 0  ;;  %s321_s9 = smov [#allocation2]  }
   0x3   :  { %s15_s10 = sshll.u32 %s321_s9, 4  ;;  %s16_s10 = int_to_ptr.vmem [resolvable:$true] %s15_s10 }
   0x4   :  { %s263_s11 = scalar_lea.vmem %s16_s10, 1024  ;;  %p268_p1 = scmp.lt.s32.totalorder %s16_s10, %s16_s10 }
   0x5   :  { %p264_p0 = scmp.ne.s32.totalorder %s16_s10, %s263_s11  ;;  %p269_p2 = scmp.lt.s32.totalorder %s263_s11, %s263_s11 }
   0x7   :  { %p270_p3 = por %p269_p2, %p268_p1 }
   0x9   :  { %p271_p4 = pnand %p270_p3, %p264_p0 }
   0xb   :  { %274 = shalt.err (!%p271_p4)
}
   0xc   :  { %s322_s12 = smov 128   ;;  %s323_s13 = smov 8  }
   0xd   :  { %21 = dma.hbm_to_vmem [thread:$0]  %s362_s0, 1024, %s16_s10, [#allocation3], %s322_s12, %s322_s12, %s323_s13  }
   0xe   :  { %s324_s16 = smov [#allocation5]  }
   0xf   :  { %s27_s17 = sshll.u32 %s324_s16, 4  ;;  %s28_s17 = int_to_ptr.vmem [resolvable:$true] %s27_s17 }
  0x10   :  { %s283_s18 = scalar_lea.vmem %s28_s17, 512  ;;  %p288_p6 = scmp.lt.s32.totalorder %s28_s17, %s28_s17 }
  0x11   :  { %p284_p5 = scmp.ne.s32.totalorder %s28_s17, %s283_s18  ;;  %p289_p7 = scmp.lt.s32.totalorder %s283_s18, %s283_s18 }
  0x13   :  { %p290_p8 = por %p289_p7, %p288_p6 }
  0x15   :  { %p291_p9 = pnand %p290_p8, %p284_p5 }
  0x17   :  { %294 = shalt.err (!%p291_p9)
}
  0x18   :  { %33 = dma.hbm_to_vmem [thread:$0]  %s363_s1, 512, %s28_s17, [#allocation6], %s322_s12, %s322_s12, %s323_s13  }
  0x19   :  { %315 = dma.done.wait [#allocation3], 1024  }
  0x1a   :  { %316 = vsyncadd [#allocation3], 4294966272 }
  0x1b   :  { %317 = dma.done.wait [#allocation6], 512  }
  0x1c   :  { %318 = vsyncadd [#allocation6], 4294966784  ;;  %vm48_vm0 = vcmask 523264   ;;  %v44_v0 = vld [vmem:[#allocation2 + $0x20] sm:$0xff]  ;;  %v45_v2 = vld [vmem:[#allocation2 + $0x28] sm:$0xff]  ;;  %v325_v16 = vmov 0.0   ;;  %v93_v21 = vlaneseq }
  0x1d   :  { %v40_v1 = vld [vmem:[#allocation2] sm:$0xff]  ;;  %v61_v3 = vsel %vm48_vm0, %v44_v0, 0.0  ;;  %v41_v5 = vld [vmem:[#allocation2 + $0x8] sm:$0xff]  ;;  %v64_v6 = vsel %vm48_vm0, %v45_v2, 0.0  ;;  %v46_v8 = vld [vmem:[#allocation2 + $0x30] sm:$0xff]  ;;  %237 = vmatprep.subr.mxu0 %v325_v16  ;;  %vm326_vm1 = vmmov 0  }
  0x1e   :  { %v49_v4 = vsel %vm48_vm0, %v40_v1, 0.0  ;;  %62 = vadd.xlane.f32.xlu1 %v61_v3  ;;  %v52_v7 = vsel %vm48_vm0, %v41_v5, 0.0  ;;  %v42_v9 = vld [vmem:[#allocation2 + $0x10] sm:$0xff]  ;;  %v67_v10 = vsel %vm48_vm0, %v46_v8, 0.0  ;;  %v47_v12 = vld [vmem:[#allocation2 + $0x38] sm:$0xff]  ;;  %v82_v19 = vld [vmem:[#allocation5 + $0x8] sm:$0xff]  ;;  %245 = vmatprep.mubr.msk.f32.mxu0 %vm326_vm1, %v325_v16 }
  0x1f   :  { %50 = vadd.xlane.f32.xlu0 %v49_v4  ;;  %v55_v11 = vsel %vm48_vm0, %v42_v9, 0.0  ;;  %v43_v13 = vld [vmem:[#allocation2 + $0x18] sm:$0xff]  ;;  %v70_v14 = vsel %vm48_vm0, %v47_v12, 0.0  ;;  %v83_v18 = vld [vmem:[#allocation5 + $0x10] sm:$0xff]  ;;  %v81_v20 = vld [vmem:[#allocation5] sm:$0xff]  ;;  %v94_v24 = vand.u32 127, %v93_v21 }
  0x20   :  { %v58_v15 = vsel %vm48_vm0, %v43_v13, 0.0  ;;  %v84_v17 = vld [vmem:[#allocation5 + $0x18] sm:$0xff]  ;;  %v96_v26 = vshrl.u32 %v93_v21, 7  ;;  %vm104_vm2 = vcmask 130112   ;;  %vm111_vm3 = vcmask 195712   ;;  %s327_s0 = smov [#allocation7]  }
  0x21   :  { %238 = vmatpush3.msra.mxu0 %v84_v17  ;;  %v99_v25 = vadd.s32 4294967288, %v94_v24  ;;  %v106_v29 = vadd.s32 4294967280, %v94_v24  ;;  %v113_v33 = vadd.s32 4294967272, %v94_v24  ;;  %vm118_vm4 = vcmask 261312   ;;  %s221_s1 = sshll.u32 %s327_s0, 4  ;;  %s222_s1 = int_to_ptr.vmem [resolvable:$true] %s221_s1 }
  0x22   :  { %65 = vadd.xlane.f32.xlu1 %v64_v6  ;;  %239 = vmatprep.subr.mxu0 %v325_v16  ;;  %v97_v34 = vsub.s32 %v94_v24, %v96_v26  ;;  %vm139_vm5 = vcmask 1041409   ;;  %vm141_vm6 = vcmask 261120   ;;  %s295_s21 = scalar_lea.vmem %s222_s1, 32  ;;  %p300_p11 = scmp.lt.s32.totalorder %s222_s1, %s222_s1 }
  0x23   :  { %53 = vadd.xlane.f32.xlu0 %v52_v7  ;;  %240 = vmatpush3.msra.mxu0 %v83_v18  ;;  %v102_v30 = vsub.s32 %v99_v25, %v96_v26  ;;  %v109_v35 = vsub.s32 %v106_v29, %v96_v26  ;;  %v116_v44 = vsub.s32 %v113_v33, %v96_v26  ;;  %p296_p10 = scmp.ne.s32.totalorder %s222_s1, %s295_s21  ;;  %p301_p12 = scmp.lt.s32.totalorder %s295_s21, %s295_s21 }
  0x24   :  { %241 = vmatprep.subr.mxu0 %v325_v16 }
  0x25   :  { %242 = vmatpush3.msra.mxu0 %v82_v19  ;;  %p302_p13 = por %p301_p12, %p300_p11 }
  0x26   :  { %68 = vadd.xlane.f32.xlu1 %v67_v10  ;;  %243 = vmatprep.subr.mxu0 %v325_v16 }
  0x27   :  { %56 = vadd.xlane.f32.xlu0 %v55_v11  ;;  %244 = vmatpush3.msra.mxu0 %v81_v20  ;;  %p303_p0 = pnand %p302_p13, %p296_p10 }
  0x2a   :  { %71 = vadd.xlane.f32.xlu1 %v70_v14 }
  0x2b   :  { %59 = vadd.xlane.f32.xlu0 %v58_v15 }
  0xa7   :  { %v63_v22 = vpop.xlane.xlu1 %62 }
  0xa8   :  { %v51_v23 = vpop.xlane.xlu0 %50  ;;  %v77_v38 = vmul.f32 0.015625, %v63_v22 }
  0xa9   :  { %v73_v39 = vmul.f32 0.015625, %v51_v23 }
  0xaa   :  { %v123_v49 = vrot.slane %v77_v38, %v97_v34 }
  0xab   :  { %v66_v27 = vpop.xlane.xlu1 %65  ;;  %v98_v50 = vrot.slane %v73_v39, %v97_v34 }
  0xac   :  { %v54_v28 = vpop.xlane.xlu0 %53  ;;  %v78_v31 = vmul.f32 0.015625, %v66_v27 }
  0xad   :  { %v74_v32 = vmul.f32 0.015625, %v54_v28 }
  0xae   :  { %v127_v42 = vrot.slane %v78_v31, %v102_v30 }
  0xaf   :  { %v69_v36 = vpop.xlane.xlu1 %68  ;;  %v103_v43 = vrot.slane %v74_v32, %v102_v30 }
  0xb0   :  { %v57_v37 = vpop.xlane.xlu0 %56  ;;  %v79_v40 = vmul.f32 0.015625, %v69_v36  ;;  %v128_v53 = vsel %vm104_vm2, %v127_v42, %v123_v49 }
  0xb1   :  { %v75_v41 = vmul.f32 0.015625, %v57_v37  ;;  %v105_v54 = vsel %vm104_vm2, %v103_v43, %v98_v50 }
  0xb2   :  { %v132_v45 = vrot.slane %v79_v40, %v109_v35 }
  0xb3   :  { %v110_v46 = vrot.slane %v75_v41, %v109_v35  ;;  %v72_v47 = vpop.xlane.xlu1 %71 }
  0xb4   :  { %v60_v48 = vpop.xlane.xlu0 %59  ;;  %v80_v51 = vmul.f32 0.015625, %v72_v47  ;;  %v133_v57 = vsel %vm111_vm3, %v132_v45, %v128_v53 }
  0xb5   :  { %v76_v52 = vmul.f32 0.015625, %v60_v48  ;;  %v112_v58 = vsel %vm111_vm3, %v110_v46, %v105_v54 }
  0xb6   :  { %v137_v55 = vrot.slane %v80_v51, %v116_v44 }
  0xb7   :  { %v117_v56 = vrot.slane %v76_v52, %v116_v44 }
  0xb8   :  { %v138_v60 = vsel %vm118_vm4, %v137_v55, %v133_v57 }
  0xb9   :  { %v119_v59 = vsel %vm118_vm4, %v117_v56, %v112_v58 }
  0xba   :  { %v140_v61 = vsel %vm139_vm5, %v138_v60, %v119_v59 }
  0xbb   :  { %246 = vmatmul.mubr.msk.f32.vlgmr.msra.gmra.mxu0 %vm141_vm6, %v140_v61 }
 0x17b   :  { %v210_v62 = vpop.f32.mrf.mxu0 }
 0x17c   :  { %214 = vst [vmem:[#allocation7] sm:$0x3] %v210_v62 }
 0x17d   :  { %v247_v63 = vpop.f32.mrf.mxu0 }
 0x17e   :  { %306 = shalt.err (!%p303_p0)
}
 0x17f   :  { %224 = dma.vmem_to_hbm [thread:$0]  %s222_s1, 32, %s364_s2, [#allocation4]  }
 0x180   :  { %319 = dma.done.wait [#allocation4], 32  }
 0x181   :  { %320 = vsyncadd [#allocation4], 4294967264 }
 0x182   :  { %228 = vsyncpa [#allocation3], 1 }
 0x183   :  { %229 = vsyncpa [#allocation6], 1 }
 0x184   :  { %230 = vsyncpa [#allocation4], 1 }

</bundles_post_ra>
